<compile_context>
chip_gen: v7x
topology: tpu7x:2x2x1
jax: 0.10.0
libtpu: 0.0.40
codegen_flags: <defaults>
</compile_context>

<pallas_src>
import functools

import numpy as np
import jax
import jax.numpy as jnp
from jax import lax
from jax.experimental import pallas as pl
from jax.experimental.pallas import tpu as pltpu


def _round_up(x, m):
    return ((x + m - 1) // m) * m


def _vmem_capacity_bytes():
    """Per-TensorCore VMEM capacity; conservative fallback if the query fails."""
    try:
        return int(pltpu.get_tpu_info().vmem_capacity_bytes)
    except Exception:
        return 64 * 1024 * 1024        # v7x-sized (smallest of v5e/v6e/v7x)


def _normalize_block_rows(tb, batch):
    """Clamp a candidate row tile: either the whole batch in one block (block
    dim == full array dim, so no 8-row constraint) or a multiple of 8 <= batch."""
    tb = min(int(tb), batch)
    if tb >= batch:
        return batch
    tb = max(8, (tb // 8) * 8)
    return batch if tb >= batch else tb


def _choose_block_rows(batch, num_classes, itemsize, vmem_budget):
    # Per-row VMEM working set: double-buffered native-dtype logits block plus
    # ~3 f32-wide (TB, C) transients in the fused kernel body (sh, exp(sh), w).
    bytes_per_row = num_classes * (2 * itemsize + 12)
    rows_vmem = max(8, (vmem_budget // bytes_per_row) // 8 * 8)

    # Target >= ~2 MiB of logits per block so the ~0.35 us per-grid-step
    # overhead is negligible vs. the block DMA time (tile-size sweep).
    rows_dma = max(8, _round_up(pl.cdiv(2 * 1024 * 1024, num_classes * itemsize), 8))

    # Prefer >= 4 grid steps so ("parallel",) can shard row tiles across both
    # v7x TensorCores -- but never by shrinking blocks below the DMA target.
    rows_mc = max(8, _round_up(pl.cdiv(batch, 4), 8))

    tb = rows_vmem
    if rows_mc >= rows_dma:
        tb = min(tb, rows_mc)
    return _normalize_block_rows(tb, batch)


def _ce_label_smooth_kernel(x_ref, t_ref, loss_ref, *, epsilon, num_classes):
    # x_ref: (TB, C) logits (native dtype), t_ref: (TB, 1) int32 labels in [0, C),
    # loss_ref: (TB, 1) f32 per-row loss.
    x = x_ref[...]                                   # native dtype, no f32 copy of x
    t = t_ref[...]                                   # (TB, 1) int32
    tb, c = x.shape

    # Numerically stable log-softmax pieces; the row max is exact in bf16/f32,
    # only the shifted logits are materialized in f32.
    m = jnp.max(x, axis=1, keepdims=True)
    sh = x.astype(jnp.float32) - m.astype(jnp.float32)            # (TB, C) f32
    lse = jnp.log(jnp.sum(jnp.exp(sh), axis=1, keepdims=True))    # (TB, 1)

    # Fused weighted reduction:
    #   loss = lse - sum_c w_c * sh_c,  w_c = eps/C + (1 - eps) * [c == target]
    # (neither the smoothed one-hot target nor log_probs is ever materialized).
    col = lax.broadcasted_iota(jnp.int32, (tb, c), 1)
    base = epsilon / float(num_classes)
    w = jnp.where(col == t, 1.0 - epsilon + base, base)
    loss_ref[...] = lse - jnp.sum(w * sh, axis=1, keepdims=True)


def cross_entropy_label_smooth_loss(inputs, targets, epsilon=0.1,
                                    block_rows=None, vmem_limit_bytes=None):
    """inputs: (B, C) logits (any float dtype), targets: (B,) int labels in [0, C)."""
    B, C = inputs.shape
    targets = jnp.asarray(targets).reshape(B, 1).astype(jnp.int32)

    itemsize = np.dtype(inputs.dtype).itemsize
    cap = _vmem_capacity_bytes()
    if vmem_limit_bytes is None:
        vmem_limit_bytes = (cap * 3) // 5            # ~60% of physical VMEM
    budget = (cap * 2) // 5                          # ~40% for block sizing

    if block_rows is None:
        tb = _choose_block_rows(B, C, itemsize, budget)
    else:
        tb = _normalize_block_rows(block_rows, B)

    kernel = functools.partial(_ce_label_smooth_kernel,
                               epsilon=float(epsilon), num_classes=C)

    # TODO(synk): for LLM-vocab-scale C (>= ~32K) add a class-dim grid axis with
    # an online log-sum-exp accumulator; the whole-row layout here targets the
    # classification-head regime (C up to a few thousand).
    per_row = pl.pallas_call(
        kernel,
        out_shape=jax.ShapeDtypeStruct((B, 1), jnp.float32),
        grid=(pl.cdiv(B, tb),),                      # ragged last block, no pad
        in_specs=[pl.BlockSpec((tb, C), lambda i: (i, 0)),
                  pl.BlockSpec((tb, 1), lambda i: (i, 0))],
        out_specs=pl.BlockSpec((tb, 1), lambda i: (i, 0)),
        compiler_params=pltpu.CompilerParams(
            dimension_semantics=("parallel",),
            vmem_limit_bytes=int(vmem_limit_bytes)),
    )(inputs, targets)

    # (-t * log_probs).mean(0).sum() == sum of per-row losses / B.
    # TODO(synk): the trivial O(B) scalar reduction stays as plain JAX glue
    # (in-kernel per-block partial sums would be a negligible extra win here).
    return jnp.sum(per_row) / B


def reference_loss(inputs, targets, epsilon=0.1):
    """NumPy re-implementation of the PyTorch forward (for validation)."""
    x = np.asarray(inputs, dtype=np.float32)
    t = np.asarray(targets)
    B, C = x.shape
    m = x.max(axis=1, keepdims=True)
    lp = (x - m) - np.log(np.exp(x - m).sum(axis=1, keepdims=True))
    onehot = np.zeros((B, C), np.float32)
    onehot[np.arange(B), t] = 1.0
    smooth = (1.0 - epsilon) * onehot + epsilon / C
    return float((-smooth * lp).mean(axis=0).sum())


if __name__ == "__main__":
    eps = 0.1
    key = jax.random.PRNGKey(0)

    # Case 1: small lane-dense problem (B a multiple of 8, single grid step).
    B, C = 8, 128
    kx, kt, key = jax.random.split(key, 3)
    x = jax.random.normal(kx, (B, C), dtype=jnp.float32)
    t = jax.random.randint(kt, (B,), 0, C, dtype=jnp.int32)
    loss = jax.block_until_ready(cross_entropy_label_smooth_loss(x, t, epsilon=eps))
    ref = reference_loss(np.asarray(x), np.asarray(t), eps)
    if not np.allclose(float(loss), ref, rtol=1e-5, atol=1e-5):
        raise AssertionError(f"case1: Pallas loss {float(loss)} != reference {ref}")

    # Case 2: ragged batch (B not a multiple of the forced 8-row tile) exercises
    # the new no-pad cdiv grid + masked tail-block path.
    B2, C2 = 20, 128
    kx2, kt2 = jax.random.split(key)
    x2 = jax.random.normal(kx2, (B2, C2), dtype=jnp.float32)
    t2 = jax.random.randint(kt2, (B2,), 0, C2, dtype=jnp.int32)
    loss2 = jax.block_until_ready(
        cross_entropy_label_smooth_loss(x2, t2, epsilon=eps, block_rows=8))
    ref2 = reference_loss(np.asarray(x2), np.asarray(t2), eps)
    if not np.allclose(float(loss2), ref2, rtol=1e-5, atol=1e-5):
        raise AssertionError(f"case2: Pallas loss {float(loss2)} != reference {ref2}")

    print("KERNEL_OK")
</pallas_src>

<mosaic_0001>
module attributes {stable_mosaic.version = 11 : i64} {
  func.func @_ce_label_smooth_kernel(%arg0: i32, %arg1: memref<8x128xf32, #tpu.memory_space<vmem>>, %arg2: memref<8x1xi32, #tpu.memory_space<vmem>>, %arg3: memref<8x1xf32, #tpu.memory_space<vmem>>) attributes {dimension_semantics = [#tpu.dimension_semantics<parallel>], iteration_bounds = array<i64: 1>, scalar_prefetch = 0 : i64, scratch_operands = 0 : i64, tpu.core_type = #tpu.core_type<tc>, window_params = [{transform_indices = @transform_0, window_bounds = array<i64: 8, 128>}, {transform_indices = @transform_1, window_bounds = array<i64: 8, 1>}, {transform_indices = @transform_2, window_bounds = array<i64: 8, 1>}]} {
    %c0 = arith.constant 0 : index
    %c0_0 = arith.constant 0 : index
    %0 = vector.load %arg1[%c0, %c0_0] : memref<8x128xf32, #tpu.memory_space<vmem>>, vector<8x128xf32>
    %c0_1 = arith.constant 0 : index
    %c0_2 = arith.constant 0 : index
    %1 = vector.load %arg2[%c0_1, %c0_2] : memref<8x1xi32, #tpu.memory_space<vmem>>, vector<8x1xi32>
    %cst = arith.constant dense<0xFF800000> : vector<8xf32>
    %2 = vector.multi_reduction <maximumf>, %0, %cst [1] : vector<8x128xf32> to vector<8xf32>
    %3 = vector.shape_cast %2 : vector<8xf32> to vector<8x1xf32>
    %4 = vector.broadcast %3 : vector<8x1xf32> to vector<8x128xf32>
    %5 = arith.subf %0, %4 : vector<8x128xf32>
    %6 = math.exp %5 : vector<8x128xf32>
    %cst_3 = arith.constant dense<0.000000e+00> : vector<8xf32>
    %7 = vector.multi_reduction <add>, %6, %cst_3 [1] : vector<8x128xf32> to vector<8xf32>
    %8 = vector.shape_cast %7 : vector<8xf32> to vector<8x1xf32>
    %9 = math.log %8 : vector<8x1xf32>
    %10 = tpu.iota {dimensions = array<i32: 1>} : vector<8x128xi32>
    %11 = vector.broadcast %1 : vector<8x1xi32> to vector<8x128xi32>
    %12 = arith.cmpi eq, %10, %11 : vector<8x128xi32>
    %cst_4 = arith.constant 0.900781273 : f32
    %cst_5 = arith.constant 7.812500e-04 : f32
    %13 = vector.broadcast %cst_4 : f32 to vector<8x128xf32>
    %14 = vector.broadcast %cst_5 : f32 to vector<8x128xf32>
    %15 = arith.select %12, %13, %14 : vector<8x128xi1>, vector<8x128xf32>
    %16 = arith.mulf %15, %5 : vector<8x128xf32>
    %cst_6 = arith.constant dense<0.000000e+00> : vector<8xf32>
    %17 = vector.multi_reduction <add>, %16, %cst_6 [1] : vector<8x128xf32> to vector<8xf32>
    %18 = vector.shape_cast %17 : vector<8xf32> to vector<8x1xf32>
    %19 = arith.subf %9, %18 : vector<8x1xf32>
    %c0_7 = arith.constant 0 : index
    %c0_8 = arith.constant 0 : index
    %20 = vector.load %arg3[%c0_7, %c0_8] : memref<8x1xf32, #tpu.memory_space<vmem>>, vector<8x1xf32>
    tpu.vector_store %arg3[%c0_7, %c0_8], %19 {strides = array<i32>} : memref<8x1xf32, #tpu.memory_space<vmem>>, vector<8x1xf32>,
    return
  }
  func.func @transform_0(%arg0: i32) -> (i32, i32) {
    %c0_i32 = arith.constant 0 : i32
    %c0_i32_0 = arith.constant 0 : i32
    return %arg0, %c0_i32 : i32, i32
  }
  func.func @transform_1(%arg0: i32) -> (i32, i32) {
    %c0_i32 = arith.constant 0 : i32
    %c0_i32_0 = arith.constant 0 : i32
    return %arg0, %c0_i32 : i32, i32
  }
  func.func @transform_2(%arg0: i32) -> (i32, i32) {
    %c0_i32 = arith.constant 0 : i32
    %c0_i32_0 = arith.constant 0 : i32
    return %arg0, %c0_i32 : i32, i32
  }
}

</mosaic_0001>

<bundles_post_ra>
// kernel: tpu_custom_call.1
= control target key start
LH: loop header
LB: loop body
LE: loop exit
PB: predicated region body
PF: predicated region fallthrough
CT: control target
= control target key end

     0   :  { %v46_v1 = vmov 0   ;;  %v22_v6 = vlaneseq  ;;  %v47_v10 = vmov 0.00078125   ;;  %vm33_vm1 = vcmask 7168   ;;  %s72_s0 = inlined_call_operand.vmem [shape: f32[8,128], index: 0, kind: input, shape index: {}]   ;;  %s73_s1 = inlined_call_operand.vmem [shape: s32[8,1], index: 1, kind: input, shape index: {}]   ;;  %s74_s2 = inlined_call_operand.vmem [shape: f32[8,1], index: 2, kind: output, shape index: {}]  }
   0x1   :  { %v11_v0 = vld [vmem:[%s72_s0] sm:$0xff]  ;;  %41 = vset.pattern.permute.xlu0 %v46_v1 }
   0x2   :  { %13 = vmax.xlane.f32.xlu0 %v11_v0  ;;  %v12_v2 = vld [vmem:[%s73_s1] sm:$0xff]  ;;  %v23_v7 = vand.u32 127, %v22_v6 }
  0x18   :  { %25 = vperm.xlu0 %41, %v12_v2  }
  0x8f   :  { %v14_v3 = vpop.xlane.xlu0 %13 }
  0x90   :  { %v15_v4 = vsub.f32 %v11_v0, %v14_v3 }
  0x92   :  { %v16_v5 = vmul.f32 1.442695, %v15_v4 }
  0x94   :  { %42 = vpow2.f32 %v16_v5 }
  0x97   :  { %v26_v8 = vpop.permute.xlu0 %25 }
  0x98   :  { %vm27_vm0 = vcmp.eq.s32.totalorder %v23_v7, %v26_v8 }
  0x99   :  { %v28_v11 = vsel %vm27_vm0, 0.9007813, %v47_v10 }
  0x9a   :  { %v29_v12 = vmul.f32 %v28_v11, %v15_v4 }
  0x9e   :  { %v43_v9 = vpop.eup %42 }
  0x9f   :  { %18 = vadd.xlane.f32.xlu1 %v43_v9 }
  0xa3   :  { %30 = vadd.xlane.f32.xlu1 %v29_v12 }
 0x12c   :  { %v19_v13 = vpop.xlane.xlu1 %18 }
 0x12d   :  { %44 = vlog2.f32 %v19_v13 }
 0x130   :  { %v31_v16 = vpop.xlane.xlu1 %30 }
 0x137   :  { %v45_v14 = vpop.eup %44 }
 0x138   :  { %v21_v15 = vmul.f32 0.6931472, %v45_v14 }
 0x13a   :  { %v32_v17 = vsub.f32 %v21_v15, %v31_v16 }
 0x13c   :  { %34 = vst.msk [vmem:[%s74_s2] sm:$0xff] %vm33_vm1, %v32_v17 }

</bundles_post_ra>
